<compile_context>
chip_gen: v5e
topology: v5e:2x2
jax: 0.10.0
libtpu: 0.0.40
codegen_flags: <defaults>
</compile_context>

<pallas_src>
import math

import jax
import jax.numpy as jnp
from jax.experimental import pallas as pl
from jax.experimental.pallas import tpu as pltpu


_LANE = 128                       # lane granularity
_COL_CAP = 4096                   # max lane-tile width (elements)
_TILE_BYTES = 4 * 1024 * 1024     # ~4 MiB streaming x-tiles
_VMEM_LIMIT = 48 * 1024 * 1024    # explicit scoped-VMEM budget (all gens)


def eca_kernel_size(channel, b=1, gamma=2):
    """Same formula as the PyTorch module."""
    k = int(abs((math.log(channel, 2) + b) / gamma))
    return k if k % 2 else k + 1


def _sublane(dtype):
    """Packed-tile sublane granularity: 8 (f32), 16 (bf16), 32 (int8/fp8)."""
    return max(8, 32 // jnp.dtype(dtype).itemsize)


def eca_forward(x, weight):
    """ECA block forward.  x: (N, C, H, W); weight: (k,) conv1d taps (no bias)."""
    N, C, H, W = x.shape
    k = int(weight.shape[0])
    pad = (k - 1) // 2
    hw = H * W
    R = N * C

    # Lane-dense 2-D view: one row per (n, c) plane.  Contiguous, no copy.
    x2d = x.reshape(R, hw)

    # ---- tile selection -----------------------------------------------------
    sub = _sublane(x.dtype)
    itemsize = jnp.dtype(x.dtype).itemsize
    tc = hw if hw <= _COL_CAP else _COL_CAP
    rows_cap = max(sub, (_TILE_BYTES // (tc * itemsize)) // sub * sub)
    # Guarantee >= 2 row blocks when possible so both v7x TensorCores stream.
    half_rows = max(sub, (((R + 1) // 2) + sub - 1) // sub * sub)
    tr = min(rows_cap, half_rows)
    grid_r = pl.cdiv(R, tr)
    grid_c = pl.cdiv(hw, tc)

    inv_hw = 1.0 / float(hw)
    last_cols = hw - (grid_c - 1) * tc       # valid columns in the last block
    ragged_cols = last_cols != tc

    # MXU ones-reduce only pays off for sub-f32 dtypes (free widening); for
    # f32 the plain row-sum is exact and already load-bound.
    use_mxu_reduce = jnp.dtype(x.dtype) != jnp.dtype(jnp.float32)

    # ---- pass 1: global average pool over H,W (per-row means) ----------------
    pool_in_specs = [pl.BlockSpec((tr, tc), lambda i, j: (i, j))]
    pool_args = [x2d]
    if use_mxu_reduce:
        # Reduction matrix: column 0 is 1, rest 0 -> row-sum as one MXU matmul.
        ones_col = jnp.zeros((tc, _LANE), x.dtype).at[:, 0].set(1)
        pool_in_specs.append(pl.BlockSpec((tc, _LANE), lambda i, j: (0, 0)))
        pool_args.append(ones_col)

    def _pool_kernel(x_ref, *rest):
        if use_mxu_reduce:
            ones_ref, mean_ref, acc_ref = rest
        else:
            mean_ref, acc_ref = rest
        j = pl.program_id(1)

        @pl.when(j == 0)
        def _():
            acc_ref[...] = jnp.zeros_like(acc_ref)

        def _accum(xv):
            if use_mxu_reduce:
                acc_ref[...] += jnp.dot(xv, ones_ref[...],
                                        preferred_element_type=jnp.float32)
            else:
                acc_ref[...] += jnp.sum(xv.astype(jnp.float32), axis=1,
                                        keepdims=True)

        if ragged_cols:
            # Masked accumulate ONLY on the last (ragged) reduction block.
            @pl.when(j == grid_c - 1)
            def _():
                xv = x_ref[...]
                col = jax.lax.broadcasted_iota(jnp.int32, xv.shape, 1)
                _accum(jnp.where(col < last_cols, xv, jnp.zeros_like(xv)))

            @pl.when(j < grid_c - 1)
            def _():
                _accum(x_ref[...])
        else:
            _accum(x_ref[...])

        @pl.when(j == grid_c - 1)
        def _():
            mean_ref[...] = acc_ref[...][:, 0:1] * inv_hw

    means = pl.pallas_call(
        _pool_kernel,
        out_shape=jax.ShapeDtypeStruct((R, 1), jnp.float32),
        grid_spec=pltpu.PrefetchScalarGridSpec(
            num_scalar_prefetch=0,
            grid=(grid_r, grid_c),
            in_specs=pool_in_specs,
            out_specs=pl.BlockSpec((tr, 1), lambda i, j: (i, 0)),
            scratch_shapes=[pltpu.VMEM((tr, _LANE), jnp.float32)]),
        compiler_params=pltpu.CompilerParams(
            dimension_semantics=("parallel", "arbitrary"),
            vmem_limit_bytes=_VMEM_LIMIT),
    )(*pool_args)

    # ---- pass 2: k-tap channel conv + sigmoid gate (tiny, plain JAX) ---------
    # O(N*C*k) work: a pallas_call launch + O(C^2) band matrix would dominate
    # for small x and blow VMEM for large C, so compute it directly.
    means_nc = means.reshape(N, C)
    mp = jnp.pad(means_nc, ((0, 0), (pad, pad)))
    w = weight.astype(jnp.float32)
    att = sum(w[t] * mp[:, t:t + C] for t in range(k))
    att = jax.nn.sigmoid(att).reshape(R, 1)          # per-(n,c) gate, f32

    # ---- pass 3: apply the per-channel gate to x ------------------------------
    def _scale_kernel(x_ref, a_ref, o_ref):
        a = a_ref[...].astype(x_ref.dtype)           # native-dtype multiply
        o_ref[...] = x_ref[...] * a

    out2d = pl.pallas_call(
        _scale_kernel,
        out_shape=jax.ShapeDtypeStruct((R, hw), x.dtype),
        grid_spec=pltpu.PrefetchScalarGridSpec(
            num_scalar_prefetch=0,
            grid=(grid_r, grid_c),
            in_specs=[pl.BlockSpec((tr, tc), lambda i, j: (i, j)),
                      pl.BlockSpec((tr, 1), lambda i, j: (i, 0))],
            out_specs=pl.BlockSpec((tr, tc), lambda i, j: (i, j)),
        ),
        compiler_params=pltpu.CompilerParams(
            dimension_semantics=("parallel", "parallel"),
            vmem_limit_bytes=_VMEM_LIMIT),
    )(x2d, att)

    return out2d.reshape(N, C, H, W)


if __name__ == "__main__":
    key = jax.random.PRNGKey(0)
    kx, kw = jax.random.split(key)

    # Small NCHW example; C=16 -> ECA kernel_size = 3 (non-trivial conv path).
    N, C, H, W = 2, 16, 16, 16
    x = jax.random.normal(kx, (N, C, H, W), dtype=jnp.float32)
    k = eca_kernel_size(C)
    weight = 0.5 * jax.random.normal(kw, (k,), dtype=jnp.float32)

    y = eca_forward(x, weight)
    jax.block_until_ready(y)

    # --- plain-JAX reference of the PyTorch forward ---------------------------
    pad = (k - 1) // 2
    pooled = jnp.mean(x.astype(jnp.float32), axis=(2, 3))              # (N, C)
    pooled_pad = jnp.pad(pooled, ((0, 0), (pad, pad)))
    att_ref = sum(weight[t] * pooled_pad[:, t:t + C] for t in range(k))
    att_ref = jax.nn.sigmoid(att_ref)
    y_ref = (x * att_ref[:, :, None, None]).astype(x.dtype)

    assert y.shape == x.shape and y.dtype == x.dtype
    max_err = float(jnp.max(jnp.abs(y.astype(jnp.float32) - y_ref.astype(jnp.float32))))
    assert jnp.allclose(y, y_ref, atol=2e-3, rtol=2e-3), max_err
    print("KERNEL_OK")
</pallas_src>

<mosaic_0001>
module attributes {stable_mosaic.version = 11 : i64} {
  func.func @_pool_kernel(%arg0: i32, %arg1: i32, %arg2: memref<16x256xf32, #tpu.memory_space<vmem>>, %arg3: memref<16x1xf32, #tpu.memory_space<vmem>>, %arg4: memref<16x128xf32, #tpu.memory_space<vmem>>) attributes {dimension_semantics = [#tpu.dimension_semantics<parallel>, #tpu.dimension_semantics<arbitrary>], iteration_bounds = array<i64: 2, 1>, scalar_prefetch = 0 : i64, scratch_operands = 1 : i64, tpu.core_type = #tpu.core_type<tc>, window_params = [{transform_indices = @transform_0, window_bounds = array<i64: 16, 256>}, {transform_indices = @transform_1, window_bounds = array<i64: 16, 1>}]} {
    %c0_i32 = arith.constant 0 : i32
    %0 = arith.cmpi eq, %arg1, %c0_i32 : i32
    %1 = arith.extui %0 : i1 to i32
    %c0_i32_0 = arith.constant 0 : i32
    %2 = arith.cmpi ne, %1, %c0_i32_0 : i32
    scf.if %2 {
      %cst_8 = arith.constant 0.000000e+00 : f32
      %13 = vector.broadcast %cst_8 : f32 to vector<16x128xf32>
      %c0_9 = arith.constant 0 : index
      %c0_10 = arith.constant 0 : index
      %14 = vector.load %arg4[%c0_9, %c0_10] : memref<16x128xf32, #tpu.memory_space<vmem>>, vector<16x128xf32>
      tpu.vector_store %arg4[%c0_9, %c0_10], %13 {strides = array<i32>} : memref<16x128xf32, #tpu.memory_space<vmem>>, vector<16x128xf32>,
    } else {
    }
    %c0 = arith.constant 0 : index
    %c0_1 = arith.constant 0 : index
    %3 = vector.load %arg2[%c0, %c0_1] : memref<16x256xf32, #tpu.memory_space<vmem>>, vector<16x256xf32>
    %c0_2 = arith.constant 0 : index
    %c0_3 = arith.constant 0 : index
    %4 = vector.load %arg4[%c0_2, %c0_3] : memref<16x128xf32, #tpu.memory_space<vmem>>, vector<16x128xf32>
    %cst = arith.constant dense<0.000000e+00> : vector<16xf32>
    %5 = vector.multi_reduction <add>, %3, %cst [1] : vector<16x256xf32> to vector<16xf32>
    %6 = vector.shape_cast %5 : vector<16xf32> to vector<16x1xf32>
    %7 = vector.broadcast %6 : vector<16x1xf32> to vector<16x128xf32>
    %8 = arith.addf %4, %7 : vector<16x128xf32>
    %c0_4 = arith.constant 0 : index
    %c0_5 = arith.constant 0 : index
    %9 = vector.load %arg4[%c0_4, %c0_5] : memref<16x128xf32, #tpu.memory_space<vmem>>, vector<16x128xf32>
    tpu.vector_store %arg4[%c0_4, %c0_5], %8 {strides = array<i32>} : memref<16x128xf32, #tpu.memory_space<vmem>>, vector<16x128xf32>,
    %c0_i32_6 = arith.constant 0 : i32
    %10 = arith.cmpi eq, %arg1, %c0_i32_6 : i32
    %11 = arith.extui %10 : i1 to i32
    %c0_i32_7 = arith.constant 0 : i32
    %12 = arith.cmpi ne, %11, %c0_i32_7 : i32
    scf.if %12 {
      %c0_8 = arith.constant 0 : index
      %c0_9 = arith.constant 0 : index
      %13 = vector.load %arg4[%c0_8, %c0_9] : memref<16x128xf32, #tpu.memory_space<vmem>>, vector<16x128xf32>
      %14 = vector.extract_strided_slice %13 {offsets = [0, 0], sizes = [16, 1], strides = [1, 1]} : vector<16x128xf32> to vector<16x1xf32>
      %cst_10 = arith.constant 3.906250e-03 : f32
      %15 = vector.broadcast %cst_10 : f32 to vector<16x1xf32>
      %16 = arith.mulf %14, %15 : vector<16x1xf32>
      %c0_11 = arith.constant 0 : index
      %c0_12 = arith.constant 0 : index
      %17 = vector.load %arg3[%c0_11, %c0_12] : memref<16x1xf32, #tpu.memory_space<vmem>>, vector<16x1xf32>
      tpu.vector_store %arg3[%c0_11, %c0_12], %16 {strides = array<i32>} : memref<16x1xf32, #tpu.memory_space<vmem>>, vector<16x1xf32>,
    } else {
    }
    return
  }
  func.func @transform_0(%arg0: i32, %arg1: i32) -> (i32, i32) {
    %c0_i32 = arith.constant 0 : i32
    return %arg0, %arg1 : i32, i32
  }
  func.func @transform_1(%arg0: i32, %arg1: i32) -> (i32, i32) {
    %c0_i32 = arith.constant 0 : i32
    %c0_i32_0 = arith.constant 0 : i32
    return %arg0, %c0_i32 : i32, i32
  }
}

</mosaic_0001>

<bundles_post_ra>
// kernel: tpu_custom_call.1
= control target key start
LH: loop header
LB: loop body
LE: loop exit
PB: predicated region body
PF: predicated region fallthrough
CT: control target
= control target key end

     0   :  { %6 = vsyncpa [#allocation4], 0  ;;  %s524_s0 = inlined_call_operand.hbm [shape: f32[32,256], index: 0, kind: input, shape index: {}]   ;;  %s525_s1 = inlined_call_operand.vmem [shape: f32[32,1], index: 1, kind: output, shape index: {}]  }
   0x1   :  { %8 = vsyncpa [#allocation4 + $0x1], 0  ;;  %s437_s6 = smov 0   ;;  %s439_s7 = smov 0  }
   0x2   :  { %s441_s8 = smov 0   ;;  %s443_s9 = smov 0  }
   0x3   :  { %s445_s10 = smov 0   ;;  %s447_s11 = smov 0  }
   0x4 LB: > { %s270_s12 = sadd.s32 4294967295, %s423_s11   ;;  %s26_s13 = sadd.s32 1, %s419_s10  ;;  %s423_s11 = sphi %s447_s11, %s14_s11   ;;  %s419_s10 = sphi %s445_s10, %s532_s10   ;;  %s415_s9 = sphi %s443_s9, %s531_s9   ;;  %s411_s8 = sphi %s441_s8, %s530_s8   ;;  %s407_s7 = sphi %s439_s7, %s529_s7   ;;  %s403_s6 = sphi %s437_s6, %s528_s6  }
   0x5   : > { %p28_p0 = scmp.ge.s32.totalorder %s26_s13, 2  ;;  %s35_s14 = sadd.s32 1, %s411_s8 }
   0x6   : > { %p42_p1 = scmp.ne.s32.totalorder %s411_s8, %s407_s7  ;;  %p43_p2 = scmp.eq.s32.totalorder %s423_s11, 0 }
   0x7   : > { %s534_s13 = smov (%p28_p0, %s26_s13), 0  ;;  %p48_p4 = scmp.ne.s32.totalorder %s407_s7, %s403_s6 }
   0x8   : > { %p473_p3 = por %p43_p2, %p42_p1  ;;  %s30_s16 = ssub.s32 %s419_s10, %s534_s13 }
   0x9   : > { %p49_p5 = scmp.eq.s32.totalorder %s270_s12, 0  ;;  %p33_p6 = scmp.eq.s32.totalorder %s30_s16, 0 }
   0xa   : > { %p292_p8 = scmp.lt.s32.totalorder %s423_s11, 2  ;;  %s98_s19 = sand.u32 1, %s411_s8  }
   0xb   : > { %p480_p7 = por %p49_p5, %p48_p4  ;;  %s285_s20 = sshll.u32 %s419_s10, 5 }
   0xc   : > { %s486_s18 = scalar_select %p33_p6, %s411_s8, %s35_s14  }
   0xd   : > { %s274_s21 = sshll.u32 %s98_s19, 5  ;;  %s110_s24 = scalar_lea.hbm %s524_s0, %s285_s20 }
   0xe   : > { %s111_s25 = sshll.u32 %s110_s24, 4  ;;  %s102_s26 = scalar_lea.vmem [#allocation3], %s274_s21  ;;  %s112_s25 = int_to_ptr.hbm [resolvable:$true] %s111_s25 }
   0xf   : > { %s113_s27 = sshll.u32 %s102_s26, 4  ;;  %p289_p9 = pnand %p292_p8, %p473_p3  ;;  %s114_s27 = int_to_ptr.vmem [resolvable:$true] %s113_s27 }
  0x10   : > { %p278_p10 = scmp.ge.s32.totalorder %s423_s11, 1  ;;  %p121_p11 = scmp.lt.s32.totalorder %s423_s11, 3 }
  0x11   : > { %s99_s28 = scalar_lea.sflag [#allocation4], %s98_s19  ;;  %s425_s29 = smov 256  }
  0x12   : > { %s426_s30 = smov 16   ;;  %p122_p12 = pnand %p278_p10, %p121_p11 }
  0x13   : > { %291 = dma.hbm_to_vmem [thread:$0]  (!%p289_p9), %s112_s25, 512, %s114_s27, %s99_s28, %s425_s29, %s425_s29, %s426_s30  }
  0x14   : > { %125 = sbr.rel (%p122_p12) target bundleno = 156 (0x9c), region = 24  ;;  %s127_s2 = sand.u32 (!%p122_p12), 1, %s407_s7  }
  0x15   : > { %s279_s3 = sshll.u32 (!%p122_p12), %s127_s2, 5  ;;  %s128_s4 = scalar_lea.sflag (!%p122_p12), [#allocation4], %s127_s2 }
  0x16   : > { %s131_s5 = scalar_lea.vmem (!%p122_p12), [#allocation3], %s279_s3 }
  0x19   : > { %398 = dma.done.wait (%p480_p7), %s128_s4, 512  }
  0x1a   : > { %400 = vsyncadd (%p480_p7), %s128_s4, 4294966784  ;;  %v165_v0 = vld [vmem:[%s131_s5] sm:$0xff]  ;;  %v166_v1 = vld [vmem:[%s131_s5 + $0x8] sm:$0xff]  ;;  %s280_s6 = sshll.u32 %s415_s9, 1  ;;  %vm188_vm0 = vcmask 7168  }
  0x1b   : > { %v171_v2 = vadd.f32 %v166_v1, %v165_v0  ;;  %v167_v3 = vld [vmem:[%s131_s5 + $0x10] sm:$0xff]  ;;  %v168_v4 = vld [vmem:[%s131_s5 + $0x18] sm:$0xff]  ;;  %p154_p13 = scmp.lt.s32.totalorder %s280_s6, 3 }
  0x1c   : > { %v174_v5 = vadd.f32 %v168_v4, %v167_v3 }
  0x1d   : > { %172 = vadd.xlane.f32.xlu0 %v171_v2  ;;  %s536_s6 = smov (!%p154_p13, %s280_s6), 3 }
  0x1e   : > { %s281_s12 = sshll.u32 %s536_s6, 3 }
  0x1f   : > { %s157_s16 = scalar_lea.vmem %s525_s1, %s281_s12 }
  0x25   : > { %175 = vadd.xlane.f32.xlu0 %v174_v5 }
  0x90   : > { %v173_v6 = vpop.xlane.xlu0 %172 }
  0x91   : > { %v186_v7 = vmul.f32 0.00390625, %v173_v6 }
  0x93   : > { %189 = vst.msk [vmem:[%s157_s16] sm:$0xff] %vm188_vm0, %v186_v7 }
  0x98   : > { %v176_v8 = vpop.xlane.xlu0 %175 }
  0x99   : > { %v187_v9 = vmul.f32 0.00390625, %v176_v8 }
  0x9b   : > { %190 = vst.msk [vmem:[%s157_s16 + $0x8] sm:$0xff] %vm188_vm0, %v187_v9 }
  0x9c PF: > { %s14_s11 = sadd.s32 1, %s423_s11   ;;  %s528_s6 = smov %s407_s7 }
  0x9d   : > { %p11_p0 = scmp.ge.s32.totalorder %s14_s11, 4   ;;  %s529_s7 = smov %s411_s8 }
  0x9e   : > { %s530_s8 = smov %s486_s18  ;;  %s531_s9 = smov %s419_s10 }
  0x9f   : > { %s532_s10 = smov %s534_s13  ;;  %13 = sbr.rel (!%p11_p0) target bundleno = 4 (0x4), region = 72 }
  0xa4   :  { %213 = vsyncpa [#allocation4], 1 }
  0xa5   :  { %215 = vsyncpa [#allocation4 + $0x1], 1 }

</bundles_post_ra>
